<compile_context>
chip_gen: v5e
topology: v5e:2x2
jax: 0.10.0
libtpu: 0.0.40
codegen_flags: <defaults>
</compile_context>

<pallas_src>
import functools

import jax
import jax.numpy as jnp
from jax.experimental import pallas as pl
from jax.experimental.pallas import tpu as pltpu


def _coordpool_kernel(x_ref, p_ref, w1_ref, s1_ref, t1_ref, w2_ref,
                      bh_ref, bw_ref, o_ref, *, h, w, oup, bt):
    # x_ref:  (bt, c, h*w)       flattened spatial slab for bt batch elements
    # p_ref:  (h*w, h+w)         constant pooling matrix (1/w, 1/h folded in)
    # w1_ref: (mip, c)           conv1 1x1 weight
    # s1_ref: (mip, 1) f32       folded BN scale  = gamma / sqrt(var + eps)
    # t1_ref: (mip, 1) f32       folded BN shift  = beta + (b1 - mean) * scale
    # w2_ref: (2*oup, mip)       [Wh; Ww] stacked, pre-scaled by 1/6
    # bh_ref: (oup, 1) f32       conv_h bias
    # bw_ref: (oup, 1) f32       conv_w bias
    # o_ref:  (bt, oup, h+w)
    pmat = p_ref[...]
    w1 = w1_ref[...]
    s1 = s1_ref[...]
    t1 = t1_ref[...]
    w2 = w2_ref[...]
    bh = bh_ref[...]
    bw = bw_ref[...]

    for b in range(bt):  # bt is small & static; unrolled
        x = x_ref[b]                                                  # (c, h*w)
        # Both coordinate pools in one MXU matmul (f32 accumulation).
        pooled = jnp.dot(x, pmat,
                         preferred_element_type=jnp.float32)         # (c, h+w)
        # conv1 (1x1) -> folded BN -> h_swish (1/6 folded into w2).
        y = jnp.dot(w1, pooled.astype(w1.dtype),
                    preferred_element_type=jnp.float32)               # (mip, h+w)
        y = y * s1 + t1
        y = y * jnp.clip(y + 3.0, 0.0, 6.0)                           # 6 * h_swish
        # Fused conv_h / conv_w as one stacked matmul.
        a = jnp.dot(w2, y.astype(w2.dtype),
                    preferred_element_type=jnp.float32)               # (2*oup, h+w)
        o_ref[b, :, 0:h] = (a[0:oup, 0:h] + bh).astype(o_ref.dtype)
        o_ref[b, :, h:h + w] = (a[oup:2 * oup, h:h + w] + bw).astype(o_ref.dtype)


def _pick_block_batch(n, per_batch_bytes, cap=8, vmem_cap=8 << 20):
    """Batch elements per grid step: amortize per-step overhead, keep >=2
    grid blocks when n is even (v7x megacore), cap per-block VMEM."""
    bt = max(1, min(cap, vmem_cap // max(per_batch_bytes, 1)))
    if n % 2 == 0 and n >= 2:
        bt = min(bt, n // 2)
    bt = max(1, min(bt, n))
    while n % bt != 0:
        bt -= 1
    return bt


def coord_pool(x, params, *, eps=1e-5):
    """x: (n, c, h, w).  params = (w1, b1, gamma, beta, mean, var, wh, bh, ww, bw).
    Returns (n, oup, h + w, 1), matching PyTorch CoordPool.forward (eval mode)."""
    w1, b1, gamma, beta, mean, var, wh, bh, ww, bw = params
    n, c, h, w = x.shape
    mip = w1.shape[0]
    oup = wh.shape[0]
    hw = h * w

    # --- wrapper-side prep (all tiny, one-time) -----------------------------
    # Fold conv1 bias + BatchNorm (inference) into per-channel scale/shift.
    inv_std = 1.0 / jnp.sqrt(var.astype(jnp.float32) + eps)
    scale = (gamma.astype(jnp.float32) * inv_std).reshape(mip, 1)
    shift = (beta.astype(jnp.float32)
             + (b1.astype(jnp.float32) - mean.astype(jnp.float32))
             * gamma.astype(jnp.float32) * inv_std).reshape(mip, 1)

    # Constant pooling matrix P (h*w, h+w): column t<h averages row t over W,
    # column h+t averages column t over H.
    rows = jnp.arange(hw)
    ri = rows // w
    cj = rows % w
    p_h = (ri[:, None] == jnp.arange(h)[None, :]).astype(jnp.float32) * (1.0 / w)
    p_w = (cj[:, None] == jnp.arange(w)[None, :]).astype(jnp.float32) * (1.0 / h)
    pmat = jnp.concatenate([p_h, p_w], axis=1).astype(x.dtype)        # (hw, h+w)

    # Stack the two output convs and fold h_swish's 1/6 into the weight.
    w2 = (jnp.concatenate([wh, ww], axis=0) * (1.0 / 6.0)).astype(wh.dtype)
    bh2 = bh.astype(jnp.float32).reshape(oup, 1)
    bw2 = bw.astype(jnp.float32).reshape(oup, 1)

    # Flatten spatial (free reshape of contiguous trailing dims).
    x_flat = x.reshape(n, c, hw)

    bt = _pick_block_batch(n, c * hw * x.dtype.itemsize)
    grid_n = n // bt

    kernel = functools.partial(_coordpool_kernel, h=h, w=w, oup=oup, bt=bt)

    out = pl.pallas_call(
        kernel,
        out_shape=jax.ShapeDtypeStruct((n, oup, h + w), x.dtype),
        grid_spec=pltpu.PrefetchScalarGridSpec(
            num_scalar_prefetch=0,
            grid=(grid_n,),
            in_specs=[
                pl.BlockSpec((bt, c, hw), lambda b: (b, 0, 0)),   # x slab
                pl.BlockSpec((hw, h + w), lambda b: (0, 0)),      # pooling matrix
                pl.BlockSpec((mip, c), lambda b: (0, 0)),         # W1
                pl.BlockSpec((mip, 1), lambda b: (0, 0)),         # BN scale
                pl.BlockSpec((mip, 1), lambda b: (0, 0)),         # BN shift
                pl.BlockSpec((2 * oup, mip), lambda b: (0, 0)),   # [Wh;Ww]/6
                pl.BlockSpec((oup, 1), lambda b: (0, 0)),         # bh
                pl.BlockSpec((oup, 1), lambda b: (0, 0)),         # bw
            ],
            out_specs=pl.BlockSpec((bt, oup, h + w), lambda b: (b, 0, 0)),
        ),
        compiler_params=pltpu.CompilerParams(
            dimension_semantics=("parallel",)),
    )(x_flat, pmat, w1, scale, shift, w2, bh2, bw2)

    return out.reshape(n, oup, h + w, 1)


def init_params(key, inp, oup, dtype=jnp.float32):
    """Deterministic params mimicking Conv2d/BatchNorm2d shapes of CoordPool."""
    mip = max(8, oup)
    ks = jax.random.split(key, 10)
    lim1 = 1.0 / (inp ** 0.5)
    lim2 = 1.0 / (mip ** 0.5)
    w1 = jax.random.uniform(ks[0], (mip, inp), dtype, -lim1, lim1)
    b1 = jax.random.uniform(ks[1], (mip,), dtype, -lim1, lim1)
    gamma = jax.random.uniform(ks[2], (mip,), dtype, 0.5, 1.5)
    beta = jax.random.uniform(ks[3], (mip,), dtype, -0.5, 0.5)
    rmean = jax.random.uniform(ks[4], (mip,), dtype, -0.5, 0.5)
    rvar = jax.random.uniform(ks[5], (mip,), dtype, 0.5, 1.5)
    wh = jax.random.uniform(ks[6], (oup, mip), dtype, -lim2, lim2)
    bh = jax.random.uniform(ks[7], (oup,), dtype, -lim2, lim2)
    ww = jax.random.uniform(ks[8], (oup, mip), dtype, -lim2, lim2)
    bw = jax.random.uniform(ks[9], (oup,), dtype, -lim2, lim2)
    return (w1, b1, gamma, beta, rmean, rvar, wh, bh, ww, bw)


if __name__ == "__main__":
    n, inp, oup, h, w = 2, 16, 16, 16, 12
    eps = 1e-5

    key = jax.random.PRNGKey(0)
    kx, kp = jax.random.split(key)
    x = jax.random.normal(kx, (n, inp, h, w), jnp.float32)
    params = init_params(kp, inp, oup)
    (w1, b1, gamma, beta, rmean, rvar, wh, bh, ww, bw) = params

    out = coord_pool(x, params, eps=eps)
    out = jax.block_until_ready(out)

    # Reference in plain JAX (matches PyTorch CoordPool.forward, BN in eval mode).
    x_h = x.mean(axis=3)                              # (n, c, h)
    x_w = x.mean(axis=2)                              # (n, c, w)
    y = jnp.concatenate([x_h, x_w], axis=2)           # (n, c, h+w)
    y = jnp.einsum('mc,nct->nmt', w1, y) + b1[None, :, None]
    y = (y - rmean[None, :, None]) / jnp.sqrt(rvar[None, :, None] + eps)
    y = y * gamma[None, :, None] + beta[None, :, None]
    y = y * jnp.clip(y + 3.0, 0.0, 6.0) * (1.0 / 6.0)   # h_swish
    y_h, y_w = y[:, :, :h], y[:, :, h:]
    a_h = jnp.einsum('om,nmt->not', wh, y_h) + bh[None, :, None]
    a_w = jnp.einsum('om,nmt->not', ww, y_w) + bw[None, :, None]
    ref = jnp.concatenate([a_h, a_w], axis=2)[..., None]   # (n, oup, h+w, 1)

    assert out.shape == (n, oup, h + w, 1)
    assert jnp.allclose(out, ref, atol=1e-4, rtol=1e-4), "mismatch vs reference"

    print("KERNEL_OK")
</pallas_src>

<mosaic_0001>
module attributes {stable_mosaic.version = 11 : i64} {
  func.func @_coordpool_kernel(%arg0: i32, %arg1: memref<1x16x192xf32, #tpu.memory_space<vmem>>, %arg2: memref<192x28xf32, #tpu.memory_space<vmem>>, %arg3: memref<16x16xf32, #tpu.memory_space<vmem>>, %arg4: memref<16x1xf32, #tpu.memory_space<vmem>>, %arg5: memref<16x1xf32, #tpu.memory_space<vmem>>, %arg6: memref<32x16xf32, #tpu.memory_space<vmem>>, %arg7: memref<16x1xf32, #tpu.memory_space<vmem>>, %arg8: memref<16x1xf32, #tpu.memory_space<vmem>>, %arg9: memref<1x16x28xf32, #tpu.memory_space<vmem>>) attributes {dimension_semantics = [#tpu.dimension_semantics<parallel>], iteration_bounds = array<i64: 2>, scalar_prefetch = 0 : i64, scratch_operands = 0 : i64, tpu.core_type = #tpu.core_type<tc>, window_params = [{transform_indices = @transform_0, window_bounds = array<i64: 1, 16, 192>}, {pipeline_mode = #tpu.pipeline_mode<synchronous>, transform_indices = @transform_1, window_bounds = array<i64: 192, 28>}, {pipeline_mode = #tpu.pipeline_mode<synchronous>, transform_indices = @transform_2, window_bounds = array<i64: 16, 16>}, {pipeline_mode = #tpu.pipeline_mode<synchronous>, transform_indices = @transform_3, window_bounds = array<i64: 16, 1>}, {pipeline_mode = #tpu.pipeline_mode<synchronous>, transform_indices = @transform_4, window_bounds = array<i64: 16, 1>}, {pipeline_mode = #tpu.pipeline_mode<synchronous>, transform_indices = @transform_5, window_bounds = array<i64: 32, 16>}, {pipeline_mode = #tpu.pipeline_mode<synchronous>, transform_indices = @transform_6, window_bounds = array<i64: 16, 1>}, {pipeline_mode = #tpu.pipeline_mode<synchronous>, transform_indices = @transform_7, window_bounds = array<i64: 16, 1>}, {transform_indices = @transform_8, window_bounds = array<i64: 1, 16, 28>}]} {
    %c0 = arith.constant 0 : index
    %c0_0 = arith.constant 0 : index
    %0 = vector.load %arg2[%c0, %c0_0] : memref<192x28xf32, #tpu.memory_space<vmem>>, vector<192x28xf32>
    %c0_1 = arith.constant 0 : index
    %c0_2 = arith.constant 0 : index
    %1 = vector.load %arg3[%c0_1, %c0_2] : memref<16x16xf32, #tpu.memory_space<vmem>>, vector<16x16xf32>
    %c0_3 = arith.constant 0 : index
    %c0_4 = arith.constant 0 : index
    %2 = vector.load %arg4[%c0_3, %c0_4] : memref<16x1xf32, #tpu.memory_space<vmem>>, vector<16x1xf32>
    %c0_5 = arith.constant 0 : index
    %c0_6 = arith.constant 0 : index
    %3 = vector.load %arg5[%c0_5, %c0_6] : memref<16x1xf32, #tpu.memory_space<vmem>>, vector<16x1xf32>
    %c0_7 = arith.constant 0 : index
    %c0_8 = arith.constant 0 : index
    %4 = vector.load %arg6[%c0_7, %c0_8] : memref<32x16xf32, #tpu.memory_space<vmem>>, vector<32x16xf32>
    %c0_9 = arith.constant 0 : index
    %c0_10 = arith.constant 0 : index
    %5 = vector.load %arg7[%c0_9, %c0_10] : memref<16x1xf32, #tpu.memory_space<vmem>>, vector<16x1xf32>
    %c0_11 = arith.constant 0 : index
    %c0_12 = arith.constant 0 : index
    %6 = vector.load %arg8[%c0_11, %c0_12] : memref<16x1xf32, #tpu.memory_space<vmem>>, vector<16x1xf32>
    %c0_13 = arith.constant 0 : index
    %c0_14 = arith.constant 0 : index
    %c0_15 = arith.constant 0 : index
    %7 = vector.load %arg1[%c0_13, %c0_14, %c0_15] : memref<1x16x192xf32, #tpu.memory_space<vmem>>, vector<1x16x192xf32>
    %8 = vector.shape_cast %7 : vector<1x16x192xf32> to vector<16x192xf32>
    %cst = arith.constant dense<0.000000e+00> : vector<16x28xf32>
    %9 = tpu.matmul %8, %0, %cst {dimension_numbers = #tpu.dot_dimension_numbers<[1], [0], [0], [1], [0, 0, 1, 1], [], []>} : vector<16x192xf32>, vector<192x28xf32>, vector<16x28xf32> -> vector<16x28xf32>
    %cst_16 = arith.constant dense<0.000000e+00> : vector<16x28xf32>
    %10 = tpu.matmul %1, %9, %cst_16 {dimension_numbers = #tpu.dot_dimension_numbers<[1], [0], [0], [1], [0, 0, 1, 1], [], []>} : vector<16x16xf32>, vector<16x28xf32>, vector<16x28xf32> -> vector<16x28xf32>
    %11 = vector.broadcast %2 : vector<16x1xf32> to vector<16x28xf32>
    %12 = arith.mulf %10, %11 : vector<16x28xf32>
    %13 = vector.broadcast %3 : vector<16x1xf32> to vector<16x28xf32>
    %14 = arith.addf %12, %13 : vector<16x28xf32>
    %cst_17 = arith.constant 3.000000e+00 : f32
    %15 = vector.broadcast %cst_17 : f32 to vector<16x28xf32>
    %16 = arith.addf %14, %15 : vector<16x28xf32>
    %cst_18 = arith.constant 0.000000e+00 : f32
    %cst_19 = arith.constant 6.000000e+00 : f32
    %17 = vector.broadcast %cst_18 : f32 to vector<16x28xf32>
    %18 = arith.maximumf %17, %16 : vector<16x28xf32>
    %19 = vector.broadcast %cst_19 : f32 to vector<16x28xf32>
    %20 = arith.minimumf %19, %18 : vector<16x28xf32>
    %21 = arith.mulf %14, %20 : vector<16x28xf32>
    %cst_20 = arith.constant dense<0.000000e+00> : vector<32x28xf32>
    %22 = tpu.matmul %4, %21, %cst_20 {dimension_numbers = #tpu.dot_dimension_numbers<[1], [0], [0], [1], [0, 0, 1, 1], [], []>} : vector<32x16xf32>, vector<16x28xf32>, vector<32x28xf32> -> vector<32x28xf32>
    %23 = vector.extract_strided_slice %22 {offsets = [0, 0], sizes = [16, 16], strides = [1, 1]} : vector<32x28xf32> to vector<16x16xf32>
    %24 = vector.broadcast %5 : vector<16x1xf32> to vector<16x16xf32>
    %25 = arith.addf %23, %24 : vector<16x16xf32>
    %c0_21 = arith.constant 0 : index
    %c0_22 = arith.constant 0 : index
    %c0_23 = arith.constant 0 : index
    %26 = vector.load %arg9[%c0_21, %c0_22, %c0_23] : memref<1x16x28xf32, #tpu.memory_space<vmem>>, vector<1x16x16xf32>
    %27 = vector.shape_cast %26 : vector<1x16x16xf32> to vector<16x16xf32>
    %28 = vector.shape_cast %25 : vector<16x16xf32> to vector<1x16x16xf32>
    tpu.vector_store %arg9[%c0_21, %c0_22, %c0_23], %28 {strides = array<i32>} : memref<1x16x28xf32, #tpu.memory_space<vmem>>, vector<1x16x16xf32>,
    %29 = vector.extract_strided_slice %22 {offsets = [16, 16], sizes = [16, 12], strides = [1, 1]} : vector<32x28xf32> to vector<16x12xf32>
    %30 = vector.broadcast %6 : vector<16x1xf32> to vector<16x12xf32>
    %31 = arith.addf %29, %30 : vector<16x12xf32>
    %c0_24 = arith.constant 0 : index
    %c0_25 = arith.constant 0 : index
    %c16 = arith.constant 16 : index
    %32 = vector.load %arg9[%c0_24, %c0_25, %c16] : memref<1x16x28xf32, #tpu.memory_space<vmem>>, vector<1x16x12xf32>
    %33 = vector.shape_cast %32 : vector<1x16x12xf32> to vector<16x12xf32>
    %34 = vector.shape_cast %31 : vector<16x12xf32> to vector<1x16x12xf32>
    tpu.vector_store %arg9[%c0_24, %c0_25, %c16], %34 {strides = array<i32>} : memref<1x16x28xf32, #tpu.memory_space<vmem>>, vector<1x16x12xf32>,
    return
  }
  func.func @transform_0(%arg0: i32) -> (i32, i32, i32) {
    %c0_i32 = arith.constant 0 : i32
    %c0_i32_0 = arith.constant 0 : i32
    %c0_i32_1 = arith.constant 0 : i32
    return %arg0, %c0_i32, %c0_i32_0 : i32, i32, i32
  }
  func.func @transform_1(%arg0: i32) -> (i32, i32) {
    %c0_i32 = arith.constant 0 : i32
    %c0_i32_0 = arith.constant 0 : i32
    %c0_i32_1 = arith.constant 0 : i32
    return %c0_i32, %c0_i32_0 : i32, i32
  }
  func.func @transform_2(%arg0: i32) -> (i32, i32) {
    %c0_i32 = arith.constant 0 : i32
    %c0_i32_0 = arith.constant 0 : i32
    %c0_i32_1 = arith.constant 0 : i32
    return %c0_i32, %c0_i32_0 : i32, i32
  }
  func.func @transform_3(%arg0: i32) -> (i32, i32) {
    %c0_i32 = arith.constant 0 : i32
    %c0_i32_0 = arith.constant 0 : i32
    %c0_i32_1 = arith.constant 0 : i32
    return %c0_i32, %c0_i32_0 : i32, i32
  }
  func.func @transform_4(%arg0: i32) -> (i32, i32) {
    %c0_i32 = arith.constant 0 : i32
    %c0_i32_0 = arith.constant 0 : i32
    %c0_i32_1 = arith.constant 0 : i32
    return %c0_i32, %c0_i32_0 : i32, i32
  }
  func.func @transform_5(%arg0: i32) -> (i32, i32) {
    %c0_i32 = arith.constant 0 : i32
    %c0_i32_0 = arith.constant 0 : i32
    %c0_i32_1 = arith.constant 0 : i32
    return %c0_i32, %c0_i32_0 : i32, i32
  }
  func.func @transform_6(%arg0: i32) -> (i32, i32) {
    %c0_i32 = arith.constant 0 : i32
    %c0_i32_0 = arith.constant 0 : i32
    %c0_i32_1 = arith.constant 0 : i32
    return %c0_i32, %c0_i32_0 : i32, i32
  }
  func.func @transform_7(%arg0: i32) -> (i32, i32) {
    %c0_i32 = arith.constant 0 : i32
    %c0_i32_0 = arith.constant 0 : i32
    %c0_i32_1 = arith.constant 0 : i32
    return %c0_i32, %c0_i32_0 : i32, i32
  }
  func.func @transform_8(%arg0: i32) -> (i32, i32, i32) {
    %c0_i32 = arith.constant 0 : i32
    %c0_i32_0 = arith.constant 0 : i32
    %c0_i32_1 = arith.constant 0 : i32
    return %arg0, %c0_i32, %c0_i32_0 : i32, i32, i32
  }
}

</mosaic_0001>

<bundles_post_ra>
// kernel: tpu_custom_call.1
= control target key start
LH: loop header
LB: loop body
LE: loop exit
PB: predicated region body
PF: predicated region fallthrough
CT: control target
= control target key end

     0   :  { %13 = vsyncpa [#allocation3], 0  ;;  %s995_s0 = inlined_call_operand.vmem [shape: f32[2,16,192], index: 0, kind: input, shape index: {}]   ;;  %s996_s1 = inlined_call_operand.vmem [shape: f32[192,28], index: 1, kind: input, shape index: {}]   ;;  %s997_s2 = inlined_call_operand.vmem [shape: f32[16,16], index: 2, kind: input, shape index: {}]   ;;  %s998_s3 = inlined_call_operand.vmem [shape: f32[16,1], index: 3, kind: input, shape index: {}]   ;;  %s999_s4 = inlined_call_operand.vmem [shape: f32[16,1], index: 4, kind: input, shape index: {}]   ;;  %s1000_s5 = inlined_call_operand.vmem [shape: f32[32,16], index: 5, kind: input, shape index: {}]   ;;  %s1001_s6 = inlined_call_operand.vmem [shape: f32[16,1], index: 6, kind: input, shape index: {}]   ;;  %s1002_s7 = inlined_call_operand.vmem [shape: f32[16,1], index: 7, kind: input, shape index: {}]   ;;  %s1003_s8 = inlined_call_operand.hbm [shape: f32[2,16,28], index: 8, kind: output, shape index: {}]  }
   0x1   :  { %15 = vsyncpa [#allocation3 + $0x1], 0  ;;  %s788_s27 = smov 0   ;;  %s790_s28 = smov 0  }
   0x2   :  { %s792_s29 = smov 0   ;;  %s794_s30 = smov 0  }
   0x3 LB: > { %s809_s9 = sadd.s32 4294967295, %s738_s30   ;;  %s609_s10 = sadd.s32 4294967294, %s738_s30   ;;  %s738_s30 = sphi %s794_s30, %s1009_s30   ;;  %s734_s29 = sphi %s792_s29, %s1008_s29   ;;  %s730_s28 = sphi %s790_s28, %s1007_s28   ;;  %s726_s27 = sphi %s788_s27, %s1006_s27  }
   0x4   : > { %s813_s11 = sadd.s32 1, %s738_s30   ;;  %s201_s12 = sadd.s32 1, %s734_s29 }
   0x5   : > { %s198_s13 = ssub.s32 %s738_s30, %s813_s11  ;;  %p211_p0 = scmp.ne.s32.totalorder %s734_s29, %s730_s28 }
   0x6   : > { %p199_p1 = scmp.eq.s32.totalorder %s198_s13, 0  ;;  %p212_p2 = scmp.eq.s32.totalorder %s809_s9, 1 }
   0x7   : > { %p217_p3 = scmp.ne.s32.totalorder %s730_s28, %s726_s27  ;;  %p218_p4 = scmp.eq.s32.totalorder %s609_s10, 1 }
   0x8   : > { %s824_s14 = scalar_select %p199_p1, %s734_s29, %s201_s12  }
   0x9   : > { %p826_p5 = por %p212_p2, %p211_p0  ;;  %p830_p6 = por %p218_p4, %p217_p3 }
   0xa   : > { %p612_p7 = scmp.ge.s32.totalorder %s738_s30, 1  ;;  %p265_p8 = scmp.lt.s32.totalorder %s738_s30, 3 }
   0xc   : > { %p266_p9 = pnand %p612_p7, %p265_p8 }
   0xd   : > { %p299_p10 = scmp.lt.s32.totalorder (!%p266_p9), %s809_s9, 1  ;;  %s296_s22 = sand.u32 (!%p266_p9), 1, %s730_s28  }
   0xe   : > { %269 = sbr.rel (%p266_p9) target bundleno = 507 (0x1fb), region = 52  ;;  %s613_s23 = sshll.u32 (!%p266_p9), %s296_s22, 4 }
   0xf   : > { %s298_s24 = scalar_lea.vmem (!%p266_p9), [#allocation2], %s613_s23  ;;  %s630_s25 = sshll.u32 (!%p266_p9), %s809_s9, 4 }
  0x10   : > { %s543_s10 = scalar_lea.hbm (!%p266_p9), %s1003_s8, %s630_s25  ;;  %s544_s12 = sshll.u32 (!%p266_p9), %s298_s24, 4  ;;  %s545_s12 = int_to_ptr.vmem [resolvable:$true] %s544_s12 }
  0x11   : > { %s546_s17 = sshll.u32 (!%p266_p9), %s543_s10, 4  ;;  %s532_s18 = scalar_lea.sflag (!%p266_p9), [#allocation3], %s296_s22  ;;  %s547_s17 = int_to_ptr.hbm [resolvable:$true] %s546_s17 }
  0x12   : > { %s696_s23 = scalar_lea.hbm (!%p266_p9), %s1003_s8, 32 }
  0x13   : > { %v319_v0 = vld [vmem:[%s996_s1 + $0x78] sm:$0xff]  ;;  %v318_v1 = vld [vmem:[%s996_s1 + $0x70] sm:$0xff]  ;;  %v317_v2 = vld [vmem:[%s996_s1 + $0x68] sm:$0xff]  ;;  %s300_s20 = scalar_select %p299_p10, %s809_s9, 1  ;;  %vm346_vm0 = vcmask 523264   ;;  %v740_v30 = vmov 0  }
  0x14   : > { %353 = vmatpush.msra.mxu0 %v319_v0  ;;  %v327_v3 = vld [vmem:[%s996_s1 + $0xb8] sm:$0xff]  ;;  %v326_v4 = vld [vmem:[%s996_s1 + $0xb0] sm:$0xff]  ;;  %v316_v5 = vld [vmem:[%s996_s1 + $0x60] sm:$0xff]  ;;  %673 = vset.pattern.permute.xlu0 %v740_v30  ;;  %vm399_vm1 = vcmask 130048   ;;  %vm528_vm2 = vcmask 228480   ;;  %s690_s9 = sshra.s32 %s547_s17, 4  ;;  %s691_s9 = int_to_ptr.hbm [resolvable:$true] %s690_s9 }
  0x15   : > { %384 = vmatpush.msra.mxu1 %v327_v3  ;;  %v325_v6 = vld [vmem:[%s996_s1 + $0xa8] sm:$0xff]  ;;  %v315_v7 = vld [vmem:[%s996_s1 + $0x58] sm:$0xff]  ;;  %v324_v8 = vld [vmem:[%s996_s1 + $0xa0] sm:$0xff]  ;;  %s629_s13 = sshll.u32 %s300_s20, 5  ;;  %674 = vset.pattern.permute.xlu1 %v740_v30  ;;  %s692_s19 = scalar_lea.hbm %s691_s9, 16 }
  0x16   : > { %354 = vmatpush.msra.mxu0 %v318_v1  ;;  %v314_v9 = vld [vmem:[%s996_s1 + $0x50] sm:$0xff]  ;;  %v323_v10 = vld [vmem:[%s996_s1 + $0x98] sm:$0xff]  ;;  %v313_v11 = vld [vmem:[%s996_s1 + $0x48] sm:$0xff]  ;;  %s303_s26 = scalar_lea.vmem %s995_s0, %s629_s13  ;;  %675 = vset.pattern.permute.xlu2 %v740_v30  ;;  %p693_p11 = scmp.ne.s32.totalorder %s691_s9, %s692_s19 }
  0x17   : > { %385 = vmatpush.msra.mxu1 %v326_v4  ;;  %v322_v12 = vld [vmem:[%s996_s1 + $0x90] sm:$0xff]  ;;  %v312_v13 = vld [vmem:[%s996_s1 + $0x40] sm:$0xff]  ;;  %v321_v14 = vld [vmem:[%s996_s1 + $0x88] sm:$0xff]  ;;  %p697_p0 = scmp.lt.s32.totalorder %s691_s9, %s1003_s8  ;;  %p698_p1 = scmp.lt.s32.totalorder %s696_s23, %s692_s19 }
  0x18   : > { %355 = vmatpush.msra.mxu0 %v317_v2  ;;  %v311_v15 = vld [vmem:[%s996_s1 + $0x38] sm:$0xff]  ;;  %v320_v16 = vld [vmem:[%s996_s1 + $0x80] sm:$0xff]  ;;  %v310_v17 = vld [vmem:[%s996_s1 + $0x30] sm:$0xff]  ;;  %p694_p12 = pnand %p693_p11, %p826_p5 }
  0x19   : > { %386 = vmatpush.msra.mxu1 %v325_v6  ;;  %v343_v18 = vld [vmem:[%s303_s26 + $0x8] sm:$0xff]  ;;  %v308_v20 = vld [vmem:[%s996_s1 + $0x20] sm:$0xff]  ;;  %v307_v21 = vld [vmem:[%s996_s1 + $0x18] sm:$0xff]  ;;  %p699_p2 = por %p698_p1, %p697_p0 }
  0x1a   : > { %356 = vmatpush.msra.mxu0 %v316_v5  ;;  %v309_v19 = vld [vmem:[%s996_s1 + $0x28] sm:$0xff]  ;;  %v306_v22 = vld [vmem:[%s996_s1 + $0x10] sm:$0xff]  ;;  %v345_v23 = vld [vmem:[%s303_s26 + $0x18] sm:$0xff]  ;;  %p695_p13 = pneg %p694_p12 }
  0x1b   : > { %387 = vmatpush.msra.mxu1 %v324_v8  ;;  %v305_v24 = vld [vmem:[%s996_s1 + $0x8] sm:$0xff]  ;;  %v304_v25 = vld [vmem:[%s996_s1] sm:$0xff]  ;;  %v344_v27 = vld [vmem:[%s303_s26 + $0x10] sm:$0xff] }
  0x1c   : > { %357 = vmatpush.msra.mxu0 %v315_v7  ;;  %v342_v26 = vld [vmem:[%s303_s26] sm:$0xff]  ;;  %v331_v28 = vld [vmem:[%s998_s3 + $0x8] sm:$0xff]  ;;  %v336_v1 = vld [vmem:[%s1000_s5 + $0x10] sm:$0xff]  ;;  %p700_p3 = pnand %p699_p2, %p695_p13 }
  0x1d   : > { %388 = vmatpush.msra.mxu1 %v323_v10  ;;  %v333_v29 = vld [vmem:[%s999_s4 + $0x8] sm:$0xff]  ;;  %436 = vperm.xlu0 %673, %v331_v28   ;;  %v330_v31 = vld [vmem:[%s998_s3] sm:$0xff]  ;;  %v337_v2 = vld [vmem:[%s1000_s5 + $0x18] sm:$0xff] }
  0x1e   : > { %358 = vmatpush.msra.mxu0 %v314_v9  ;;  %448 = vperm.xlu1 %674, %v333_v29   ;;  %v332_v32 = vld [vmem:[%s999_s4] sm:$0xff]  ;;  %v341_v35 = vld [vmem:[%s1002_s7 + $0x8] sm:$0xff] }
  0x1f   : > { %389 = vmatpush.msra.mxu1 %v322_v12  ;;  %v340_v34 = vld [vmem:[%s1002_s7] sm:$0xff]  ;;  %v329_v42 = vld [vmem:[%s997_s2 + $0x8] sm:$0xff] }
  0x20   : > { %359 = vmatpush.msra.mxu0 %v313_v11  ;;  %v328_v41 = vld [vmem:[%s997_s2] sm:$0xff]  ;;  %v339_v63 = vld [vmem:[%s1001_s6 + $0x8] sm:$0xff] }
  0x21   : > { %390 = vmatpush.msra.mxu1 %v321_v14  ;;  %v338_v57 = vld [vmem:[%s1001_s6] sm:$0xff]  ;;  %v335_v0 = vld [vmem:[%s1000_s5 + $0x8] sm:$0xff] }
  0x22   : > { %360 = vmatpush.msra.mxu0 %v312_v13  ;;  %504 = vperm.xlu2 %675, %v338_v57   ;;  %v334_v62 = vld [vmem:[%s1000_s5] sm:$0xff] }
  0x23   : > { %391 = vmatpush.msra.mxu1 %v320_v16 }
  0x24   : > { %361 = vmatpush.msra.mxu0 %v311_v15  ;;  %616 = vmatmul.msk.f32.vlgmr.msra.gmra.mxu1 %vm346_vm0, %v343_v18 }
  0x25   : > { %431 = vperm.xlu0 %673, %v330_v31  }
  0x26   : > { %362 = vmatpush.msra.mxu0 %v310_v17  ;;  %443 = vperm.xlu1 %674, %v332_v32  }
  0x28   : > { %363 = vmatpush.msra.mxu0 %v309_v19 }
  0x2a   : > { %364 = vmatpush.msra.mxu0 %v308_v20  ;;  %509 = vperm.xlu2 %675, %v339_v63  }
  0x2c   : > { %365 = vmatpush.msra.mxu0 %v307_v21  ;;  %617 = vmatmul.msk.f32.gmra.mxu1 %vm346_vm0, %v345_v23 }
  0x2d   : > { %518 = vperm.xlu0 %673, %v340_v34  }
  0x2e   : > { %366 = vmatpush.msra.mxu0 %v306_v22  ;;  %523 = vperm.xlu1 %674, %v341_v35  }
  0x30   : > { %367 = vmatpush.msra.mxu0 %v305_v24 }
  0x32   : > { %368 = vmatpush.msra.mxu0 %v304_v25 }
  0x33   : > { %369 = vmatmul.f32.vlgmr.msra.gmra.mxu0 %v342_v26 }
  0x3b   : > { %372 = vmatmul.f32.gmra.mxu0 %v344_v27 }
  0x7c   : > { %v505_v3 = vpop.permute.xlu2 %504 }
  0x84   : > { %v510_v6 = vpop.permute.xlu2 %509 }
  0x8f   : > { %v437_v43 = vpop.permute.xlu0 %436 }
  0x90   : > { %v449_v44 = vpop.permute.xlu1 %448 }
  0x97   : > { %v432_v45 = vpop.permute.xlu0 %431 }
  0x98   : > { %v444_v48 = vpop.permute.xlu1 %443 }
  0x9f   : > { %v519_v9 = vpop.permute.xlu0 %518 }
  0xa0   : > { %v524_v12 = vpop.permute.xlu1 %523 }
  0xa1   : > { %v393_v33 = vpop.f32.mrf.mxu1 }
  0xa9   : > { %v396_v37 = vpop.f32.mrf.mxu1 }
  0xb0   : > { %v370_v36 = vpop.f32.mrf.mxu0 }
  0xb1   : > { %v394_v40 = vadd.f32 %v393_v33, %v370_v36 }
  0xb8   : > { %v373_v38 = vpop.f32.mrf.mxu0 }
  0xb9   : > { %v397_v39 = vadd.f32 %v396_v37, %v373_v38 }
  0xbb   : > { %420 = vmatpush.msra.mxu2 %v397_v39 }
  0xbd   : > { %421 = vmatpush.msra.mxu2 %v394_v40 }
  0xbe   : > { %618 = vmatmul.msk.f32.vlgmr.msra.gmra.mxu2 %vm399_vm1, %v328_v41 }
  0xc6   : > { %619 = vmatmul.msk.f32.gmra.mxu2 %vm399_vm1, %v329_v42 }
 0x141   : > { %v423_v46 = vpop.f32.mrf.mxu2 }
 0x142   : > { %v439_v47 = vmul.f32 %v432_v45, %v423_v46 }
 0x144   : > { %v451_v49 = vadd.f32 %v444_v48, %v439_v47 }
 0x146   : > { %v453_v52 = vadd.f32 3.0, %v451_v49 }
 0x148   : > { %v455_v55 = vmax.f32 %v453_v52, 0.0 }
 0x149   : > { %v426_v50 = vpop.f32.mrf.mxu2 }
 0x14a   : > { %v440_v51 = vmul.f32 %v437_v43, %v426_v50  ;;  %v457_v59 = vmin.f32 %v455_v55, 6.0 }
 0x14c   : > { %v452_v53 = vadd.f32 %v449_v44, %v440_v51  ;;  %v459_v61 = vmul.f32 %v457_v59, %v451_v49 }
 0x14e   : > { %v454_v54 = vadd.f32 3.0, %v452_v53 }
 0x150   : > { %v456_v56 = vmax.f32 %v454_v54, 0.0 }
 0x152   : > { %v458_v58 = vmin.f32 %v456_v56, 6.0 }
 0x154   : > { %v460_v60 = vmul.f32 %v458_v58, %v452_v53 }
 0x156   : > { %487 = vmatpush.msra.mxu3 %v460_v60 }
 0x158   : > { %488 = vmatpush.msra.mxu3 %v459_v61 }
 0x159   : > { %620 = vmatmul.msk.f32.vlgmr.msra.gmra.mxu3 %vm399_vm1, %v334_v62 }
 0x161   : > { %621 = vmatmul.msk.f32.gmra.mxu3 %vm399_vm1, %v335_v0 }
 0x169   : > { %622 = vmatmul.msk.f32.gmra.mxu3 %vm399_vm1, %v336_v1 }
 0x171   : > { %623 = vmatmul.msk.f32.gmra.mxu3 %vm399_vm1, %v337_v2 }
 0x1dc   : > { %v490_v4 = vpop.f32.mrf.mxu3 }
 0x1dd   : > { %v512_v5 = vadd.f32 %v505_v3, %v490_v4 }
 0x1df   : > { %514 = vst.msk [vmem:[%s298_s24] sm:$0xff] %vm399_vm1, %v512_v5 }
 0x1e4   : > { %v493_v7 = vpop.f32.mrf.mxu3 }
 0x1e5   : > { %v513_v8 = vadd.f32 %v510_v6, %v493_v7 }
 0x1e7   : > { %515 = vst.msk [vmem:[%s298_s24 + $0x8] sm:$0xff] %vm399_vm1, %v513_v8 }
 0x1ec   : > { %v496_v10 = vpop.f32.mrf.mxu3 }
 0x1ed   : > { %v526_v11 = vadd.f32 %v519_v9, %v496_v10 }
 0x1ef   : > { %529 = vst.msk [vmem:[%s298_s24] sm:$0xff] %vm528_vm2, %v526_v11 }
 0x1f4   : > { %v499_v13 = vpop.f32.mrf.mxu3 }
 0x1f5   : > { %v527_v14 = vadd.f32 %v524_v12, %v499_v13 }
 0x1f7   : > { %530 = vst.msk [vmem:[%s298_s24 + $0x8] sm:$0xff] %vm528_vm2, %v527_v14 }
 0x1f8   : > { %703 = shalt.err (!%p700_p3)
}
 0x1f9   : > { %s741_s22 = smov 128   ;;  %s742_s24 = smov 8  }
 0x1fa   : > { %631 = dma.vmem_to_hbm [thread:$0]  (%p826_p5), %s545_s12, 256, %s547_s17, %s532_s18, %s741_s22, %s741_s22, %s742_s24  }
 0x1fb PF: > { %p637_p4 = scmp.ge.s32.totalorder %s738_s30, 2  ;;  %s561_s20 = sand.u32 1, %s726_s27  }
 0x1fc   : > { %s562_s10 = scalar_lea.sflag [#allocation3], %s561_s20 }
 0x1fd   : > { %p634_p7 = pnand %p637_p4, %p830_p6 }
 0x1ff   : > { %p635_p8 = pneg %p634_p7 }
 0x201   : > { %721 = dma.done.wait (%p635_p8), %s562_s10, 256  }
 0x202   : > { %723 = vsyncadd (%p635_p8), %s562_s10, 4294967040  ;;  %p18_p9 = scmp.ge.s32.totalorder %s813_s11, 4   ;;  %s1006_s27 = smov %s730_s28 }
 0x203   : > { %s1007_s28 = smov %s734_s29  ;;  %s1008_s29 = smov %s824_s14 }
 0x204   : > { %s1009_s30 = smov %s813_s11  ;;  %20 = sbr.rel (!%p18_p9) target bundleno = 3 (0x3), region = 87 }
 0x209   :  { %568 = vsyncpa [#allocation3], 1 }
 0x20a   :  { %570 = vsyncpa [#allocation3 + $0x1], 1 }

</bundles_post_ra>
